<compile_context>
chip_gen: v6e
topology: v6e:2x2x1
jax: 0.10.0
libtpu: 0.0.40
codegen_flags: <defaults>
</compile_context>

<pallas_src>
import functools

import jax
import jax.numpy as jnp
from jax.experimental import pallas as pl
from jax.experimental.pallas import tpu as pltpu

HIDDEN = 256
LN_EPS = 1e-5
LEAKY_SLOPE = 0.01
LANE = 128


def _round_up(n, m):
    return pl.cdiv(n, m) * m


def _leaky_relu(h):
    # Valid for 0 < slope < 1: max(h, slope*h) == leaky_relu(h).
    return jnp.maximum(h, LEAKY_SLOPE * h)


def _layernorm_noaffine(h):
    # Single pass: mean and E[h^2] from one materialized h; var clamped >= 0.
    mean = jnp.mean(h, axis=-1, keepdims=True)
    mean_sq = jnp.mean(h * h, axis=-1, keepdims=True)
    var = jnp.maximum(mean_sq - mean * mean, 0.0)
    inv = jax.lax.rsqrt(var + LN_EPS)
    return (h - mean) * inv


def actor_kernel(x_ref, vecs_ref, w1_ref, w2_ref, w3_ref, out_ref):
    # vecs slab rows: 0=b1, 1=b2' (LN1 affine folded), 2=b3' (LN2 affine folded)
    a_pad = w3_ref.shape[1]

    x = x_ref[...]                                   # (TB, S); scaling folded into w1

    # Linear(S, H) -> LeakyReLU -> LayerNorm(H) (affine folded forward)
    h = jnp.dot(x, w1_ref[...], preferred_element_type=jnp.float32) + vecs_ref[0:1, :]
    h = _leaky_relu(h)
    h = _layernorm_noaffine(h)

    # Linear(H, H) (carries g1/beta1) -> LeakyReLU -> LayerNorm(H)
    h = jnp.dot(h, w2_ref[...], preferred_element_type=jnp.float32) + vecs_ref[1:2, :]
    h = _leaky_relu(h)
    h = _layernorm_noaffine(h)

    # Linear(H, A_pad) (carries g2/beta2) -> Tanh; padded columns are exactly zero.
    y = jnp.dot(h, w3_ref[...], preferred_element_type=jnp.float32) + vecs_ref[2:3, :a_pad]
    out_ref[...] = jnp.tanh(y).astype(out_ref.dtype)


def prepare_actor_params(p):
    """One-time transform of raw Actor params into the kernel's packed layout.

    Returns (prepared_arrays_dict, action_dim).  action_dim is kept OUT of the
    dict so it stays a static Python int at the jit boundary.
    """
    S, H = p["w1"].shape
    A = p["w3"].shape[1]
    a_pad = int(_round_up(max(A, LANE), LANE))
    assert a_pad <= H, "packed-bias slab assumes padded action_dim <= hidden width"

    # Fold ScalingLayer into the first Linear:  (x*exp(ls)) @ w1 == x @ (exp(ls)[:,None]*w1)
    scale = jnp.exp(p["log_scale"]).reshape(S, 1)
    w1 = (scale * p["w1"]).astype(jnp.float32)

    # Fold LN1 affine into the second Linear.
    w2 = (p["g1"].reshape(H, 1) * p["w2"]).astype(jnp.float32)
    b2 = (p["b2"] + p["beta1"] @ p["w2"]).astype(jnp.float32)

    # Lane-pad the last layer and fold LN2 affine into it.
    w3_p = jnp.zeros((H, a_pad), jnp.float32).at[:, :A].set(p["w3"])
    w3 = (p["g2"].reshape(H, 1) * w3_p).astype(jnp.float32)
    b3 = (jnp.zeros((a_pad,), jnp.float32).at[:A].set(p["b3"])
          + p["beta2"] @ w3_p).astype(jnp.float32)

    # Pack the remaining small vectors into one (8, H) slab -> single DMA.
    vecs = jnp.zeros((8, H), jnp.float32)
    vecs = vecs.at[0, :].set(p["b1"].reshape(H))
    vecs = vecs.at[1, :].set(b2)
    vecs = vecs.at[2, :a_pad].set(b3)

    prepared = {"vecs": vecs, "w1": w1, "w2": w2, "w3": w3}
    return prepared, A


@functools.partial(jax.jit, static_argnames=("action_dim", "tb"))
def actor_forward(x, prepared, *, action_dim, tb=1024):
    B, S = x.shape
    vecs, w1, w2, w3 = prepared["vecs"], prepared["w1"], prepared["w2"], prepared["w3"]
    H = w2.shape[0]
    a_pad = w3.shape[1]

    # Batch tile: multiple of 8 (f32 sublanes).  Cap so the grid has >= 2 steps
    # when B allows it (v7x: two TensorCores can split the "parallel" axis).
    tb = max(8, min(int(tb), int(_round_up(max(pl.cdiv(B, 2), 1), 8))))
    grid = (pl.cdiv(B, tb),)   # partial last block: Pallas masks OOB output writes

    flops = 2 * B * (S * H + H * H + H * a_pad)
    transcendentals = B * (2 + a_pad)                      # 2 rsqrt + a_pad tanh per row
    bytes_accessed = 4 * (B * S + B * a_pad + S * H + H * H + H * a_pad + 8 * H)

    out = pl.pallas_call(
        actor_kernel,
        out_shape=jax.ShapeDtypeStruct((B, a_pad), jnp.float32),
        grid=grid,
        in_specs=[
            pl.BlockSpec((tb, S), lambda i: (i, 0)),        # activations: tiled over batch
            pl.BlockSpec(vecs.shape, lambda i: (0, 0)),     # packed vectors: VMEM-resident
            pl.BlockSpec(w1.shape, lambda i: (0, 0)),       # weights: VMEM-resident
            pl.BlockSpec(w2.shape, lambda i: (0, 0)),
            pl.BlockSpec(w3.shape, lambda i: (0, 0)),
        ],
        out_specs=pl.BlockSpec((tb, a_pad), lambda i: (i, 0)),
        compiler_params=pltpu.CompilerParams(
            dimension_semantics=("parallel",)),             # v7x: split batch over 2 TCs
        cost_estimate=pl.CostEstimate(
            flops=flops,
            transcendentals=transcendentals,
            bytes_accessed=bytes_accessed),
    )(x, vecs, w1, w2, w3)

    # Static column slice (action_dim is a static kwarg, not a tracer).
    return out[:, :action_dim]


def init_actor_params(key, state_dim, action_dim):
    """Deterministic synthetic init matching the PyTorch module's shapes."""
    k0, k1, k2, k3, k4, k5, k6, k7, k8, k9, k10 = jax.random.split(key, 11)

    def linear(kw, kb, fan_in, fan_out):
        bound = 1.0 / jnp.sqrt(fan_in)
        w = jax.random.uniform(kw, (fan_in, fan_out), jnp.float32, -bound, bound)
        b = jax.random.uniform(kb, (fan_out,), jnp.float32, -bound, bound)
        return w, b

    w1, b1 = linear(k1, k2, state_dim, HIDDEN)
    w2, b2 = linear(k3, k4, HIDDEN, HIDDEN)
    w3, b3 = linear(k5, k6, HIDDEN, action_dim)

    return {
        # PyTorch inits log_scale/gamma/beta to 0/1/0; use small nonzero values
        # here so the scaling path and the LN-affine folding are actually
        # exercised by the check.
        "log_scale": 0.1 * jax.random.normal(k0, (state_dim,), jnp.float32),
        "w1": w1, "b1": b1,
        "g1": 1.0 + 0.05 * jax.random.normal(k7, (HIDDEN,), jnp.float32),
        "beta1": 0.05 * jax.random.normal(k8, (HIDDEN,), jnp.float32),
        "w2": w2, "b2": b2,
        "g2": 1.0 + 0.05 * jax.random.normal(k9, (HIDDEN,), jnp.float32),
        "beta2": 0.05 * jax.random.normal(k10, (HIDDEN,), jnp.float32),
        "w3": w3, "b3": b3,
    }


def actor_reference(x, p):
    """Pure-JAX reference matching PyTorch semantics (two-pass biased-var LayerNorm)."""
    def ln(h, g, b):
        mean = jnp.mean(h, axis=-1, keepdims=True)
        var = jnp.mean((h - mean) ** 2, axis=-1, keepdims=True)
        return (h - mean) * jax.lax.rsqrt(var + LN_EPS) * g + b

    h = x * jnp.exp(p["log_scale"])
    h = h @ p["w1"] + p["b1"]
    h = jnp.where(h > 0, h, LEAKY_SLOPE * h)
    h = ln(h, p["g1"], p["beta1"])
    h = h @ p["w2"] + p["b2"]
    h = jnp.where(h > 0, h, LEAKY_SLOPE * h)
    h = ln(h, p["g2"], p["beta2"])
    return jnp.tanh(h @ p["w3"] + p["b3"])


if __name__ == "__main__":
    STATE_DIM = 32
    ACTION_DIM = 8
    BATCH = 8

    key = jax.random.PRNGKey(0)
    kx, kp, kx2 = jax.random.split(key, 3)

    params = init_actor_params(kp, STATE_DIM, ACTION_DIM)
    prepared, action_dim = prepare_actor_params(params)

    # Small-shape check (single grid step).
    x = jax.random.normal(kx, (BATCH, STATE_DIM), jnp.float32)
    out = jax.block_until_ready(actor_forward(x, prepared, action_dim=action_dim))
    ref = actor_reference(x, params)
    assert out.shape == (BATCH, ACTION_DIM)
    assert jnp.allclose(out, ref, atol=1e-4, rtol=1e-4), "mismatch vs reference (small)"

    # Multi-step batched check (exercises the ragged partial-last-block path:
    # B=300 -> tb=152 -> grid=(2,), second block masked).
    x2 = jax.random.normal(kx2, (300, STATE_DIM), jnp.float32)
    out2 = jax.block_until_ready(actor_forward(x2, prepared, action_dim=action_dim))
    ref2 = actor_reference(x2, params)
    assert out2.shape == (300, ACTION_DIM)
    assert jnp.allclose(out2, ref2, atol=1e-4, rtol=1e-4), "mismatch vs reference (batched)"

    print("KERNEL_OK")
</pallas_src>

<mosaic_0001>
module attributes {stable_mosaic.version = 11 : i64} {
  func.func @actor_kernel(%arg0: i32, %arg1: memref<8x32xf32, #tpu.memory_space<vmem>>, %arg2: memref<8x256xf32, #tpu.memory_space<vmem>>, %arg3: memref<32x256xf32, #tpu.memory_space<vmem>>, %arg4: memref<256x256xf32, #tpu.memory_space<vmem>>, %arg5: memref<256x128xf32, #tpu.memory_space<vmem>>, %arg6: memref<8x128xf32, #tpu.memory_space<vmem>>) attributes {dimension_semantics = [#tpu.dimension_semantics<parallel>], iteration_bounds = array<i64: 1>, scalar_prefetch = 0 : i64, scratch_operands = 0 : i64, tpu.core_type = #tpu.core_type<tc>, window_params = [{transform_indices = @transform_0, window_bounds = array<i64: 8, 32>}, {pipeline_mode = #tpu.pipeline_mode<synchronous>, transform_indices = @transform_1, window_bounds = array<i64: 8, 256>}, {pipeline_mode = #tpu.pipeline_mode<synchronous>, transform_indices = @transform_2, window_bounds = array<i64: 32, 256>}, {pipeline_mode = #tpu.pipeline_mode<synchronous>, transform_indices = @transform_3, window_bounds = array<i64: 256, 256>}, {pipeline_mode = #tpu.pipeline_mode<synchronous>, transform_indices = @transform_4, window_bounds = array<i64: 256, 128>}, {transform_indices = @transform_5, window_bounds = array<i64: 8, 128>}]} {
    %c0 = arith.constant 0 : index
    %c0_0 = arith.constant 0 : index
    %0 = vector.load %arg1[%c0, %c0_0] : memref<8x32xf32, #tpu.memory_space<vmem>>, vector<8x32xf32>
    %c0_1 = arith.constant 0 : index
    %c0_2 = arith.constant 0 : index
    %1 = vector.load %arg3[%c0_1, %c0_2] : memref<32x256xf32, #tpu.memory_space<vmem>>, vector<32x256xf32>
    %cst = arith.constant dense<0.000000e+00> : vector<8x256xf32>
    %2 = tpu.matmul %0, %1, %cst {dimension_numbers = #tpu.dot_dimension_numbers<[1], [0], [0], [1], [0, 0, 1, 1], [], []>} : vector<8x32xf32>, vector<32x256xf32>, vector<8x256xf32> -> vector<8x256xf32>
    %c0_3 = arith.constant 0 : index
    %c0_4 = arith.constant 0 : index
    %3 = vector.load %arg2[%c0_3, %c0_4] : memref<8x256xf32, #tpu.memory_space<vmem>>, vector<1x256xf32>
    %4 = vector.broadcast %3 : vector<1x256xf32> to vector<8x256xf32>
    %5 = arith.addf %2, %4 : vector<8x256xf32>
    %cst_5 = arith.constant 0.00999999977 : f32
    %6 = vector.broadcast %cst_5 : f32 to vector<8x256xf32>
    %7 = arith.mulf %6, %5 : vector<8x256xf32>
    %8 = arith.maximumf %5, %7 : vector<8x256xf32>
    %cst_6 = arith.constant dense<0.000000e+00> : vector<8xf32>
    %9 = vector.multi_reduction <add>, %8, %cst_6 [1] : vector<8x256xf32> to vector<8xf32>
    %10 = vector.shape_cast %9 : vector<8xf32> to vector<8x1xf32>
    %cst_7 = arith.constant 2.560000e+02 : f32
    %11 = vector.broadcast %cst_7 : f32 to vector<8x1xf32>
    %12 = arith.divf %10, %11 : vector<8x1xf32>
    %13 = arith.mulf %8, %8 : vector<8x256xf32>
    %cst_8 = arith.constant dense<0.000000e+00> : vector<8xf32>
    %14 = vector.multi_reduction <add>, %13, %cst_8 [1] : vector<8x256xf32> to vector<8xf32>
    %15 = vector.shape_cast %14 : vector<8xf32> to vector<8x1xf32>
    %cst_9 = arith.constant 2.560000e+02 : f32
    %16 = vector.broadcast %cst_9 : f32 to vector<8x1xf32>
    %17 = arith.divf %15, %16 : vector<8x1xf32>
    %18 = arith.mulf %12, %12 : vector<8x1xf32>
    %19 = arith.subf %17, %18 : vector<8x1xf32>
    %cst_10 = arith.constant 0.000000e+00 : f32
    %20 = vector.broadcast %cst_10 : f32 to vector<8x1xf32>
    %21 = arith.maximumf %19, %20 : vector<8x1xf32>
    %cst_11 = arith.constant 9.99999974E-6 : f32
    %22 = vector.broadcast %cst_11 : f32 to vector<8x1xf32>
    %23 = arith.addf %21, %22 : vector<8x1xf32>
    %24 = math.rsqrt %23 : vector<8x1xf32>
    %25 = vector.broadcast %12 : vector<8x1xf32> to vector<8x256xf32>
    %26 = arith.subf %8, %25 : vector<8x256xf32>
    %27 = vector.broadcast %24 : vector<8x1xf32> to vector<8x256xf32>
    %28 = arith.mulf %26, %27 : vector<8x256xf32>
    %c0_12 = arith.constant 0 : index
    %c0_13 = arith.constant 0 : index
    %29 = vector.load %arg4[%c0_12, %c0_13] : memref<256x256xf32, #tpu.memory_space<vmem>>, vector<256x256xf32>
    %cst_14 = arith.constant dense<0.000000e+00> : vector<8x256xf32>
    %30 = tpu.matmul %28, %29, %cst_14 {dimension_numbers = #tpu.dot_dimension_numbers<[1], [0], [0], [1], [0, 0, 1, 1], [], []>} : vector<8x256xf32>, vector<256x256xf32>, vector<8x256xf32> -> vector<8x256xf32>
    %c1 = arith.constant 1 : index
    %c0_15 = arith.constant 0 : index
    %31 = vector.load %arg2[%c1, %c0_15] : memref<8x256xf32, #tpu.memory_space<vmem>>, vector<1x256xf32>
    %32 = vector.broadcast %31 : vector<1x256xf32> to vector<8x256xf32>
    %33 = arith.addf %30, %32 : vector<8x256xf32>
    %cst_16 = arith.constant 0.00999999977 : f32
    %34 = vector.broadcast %cst_16 : f32 to vector<8x256xf32>
    %35 = arith.mulf %34, %33 : vector<8x256xf32>
    %36 = arith.maximumf %33, %35 : vector<8x256xf32>
    %cst_17 = arith.constant dense<0.000000e+00> : vector<8xf32>
    %37 = vector.multi_reduction <add>, %36, %cst_17 [1] : vector<8x256xf32> to vector<8xf32>
    %38 = vector.shape_cast %37 : vector<8xf32> to vector<8x1xf32>
    %cst_18 = arith.constant 2.560000e+02 : f32
    %39 = vector.broadcast %cst_18 : f32 to vector<8x1xf32>
    %40 = arith.divf %38, %39 : vector<8x1xf32>
    %41 = arith.mulf %36, %36 : vector<8x256xf32>
    %cst_19 = arith.constant dense<0.000000e+00> : vector<8xf32>
    %42 = vector.multi_reduction <add>, %41, %cst_19 [1] : vector<8x256xf32> to vector<8xf32>
    %43 = vector.shape_cast %42 : vector<8xf32> to vector<8x1xf32>
    %cst_20 = arith.constant 2.560000e+02 : f32
    %44 = vector.broadcast %cst_20 : f32 to vector<8x1xf32>
    %45 = arith.divf %43, %44 : vector<8x1xf32>
    %46 = arith.mulf %40, %40 : vector<8x1xf32>
    %47 = arith.subf %45, %46 : vector<8x1xf32>
    %cst_21 = arith.constant 0.000000e+00 : f32
    %48 = vector.broadcast %cst_21 : f32 to vector<8x1xf32>
    %49 = arith.maximumf %47, %48 : vector<8x1xf32>
    %cst_22 = arith.constant 9.99999974E-6 : f32
    %50 = vector.broadcast %cst_22 : f32 to vector<8x1xf32>
    %51 = arith.addf %49, %50 : vector<8x1xf32>
    %52 = math.rsqrt %51 : vector<8x1xf32>
    %53 = vector.broadcast %40 : vector<8x1xf32> to vector<8x256xf32>
    %54 = arith.subf %36, %53 : vector<8x256xf32>
    %55 = vector.broadcast %52 : vector<8x1xf32> to vector<8x256xf32>
    %56 = arith.mulf %54, %55 : vector<8x256xf32>
    %c0_23 = arith.constant 0 : index
    %c0_24 = arith.constant 0 : index
    %57 = vector.load %arg5[%c0_23, %c0_24] : memref<256x128xf32, #tpu.memory_space<vmem>>, vector<256x128xf32>
    %cst_25 = arith.constant dense<0.000000e+00> : vector<8x128xf32>
    %58 = tpu.matmul %56, %57, %cst_25 {dimension_numbers = #tpu.dot_dimension_numbers<[1], [0], [0], [1], [0, 0, 1, 1], [], []>} : vector<8x256xf32>, vector<256x128xf32>, vector<8x128xf32> -> vector<8x128xf32>
    %c2 = arith.constant 2 : index
    %c0_26 = arith.constant 0 : index
    %59 = vector.load %arg2[%c2, %c0_26] : memref<8x256xf32, #tpu.memory_space<vmem>>, vector<1x128xf32>
    %60 = vector.broadcast %59 : vector<1x128xf32> to vector<8x128xf32>
    %61 = arith.addf %58, %60 : vector<8x128xf32>
    %62 = math.tanh %61 : vector<8x128xf32>
    %c0_27 = arith.constant 0 : index
    %c0_28 = arith.constant 0 : index
    %63 = vector.load %arg6[%c0_27, %c0_28] : memref<8x128xf32, #tpu.memory_space<vmem>>, vector<8x128xf32>
    tpu.vector_store %arg6[%c0_27, %c0_28], %62 {strides = array<i32>} : memref<8x128xf32, #tpu.memory_space<vmem>>, vector<8x128xf32>,
    return
  }
  func.func @transform_0(%arg0: i32) -> (i32, i32) {
    %c0_i32 = arith.constant 0 : i32
    %c0_i32_0 = arith.constant 0 : i32
    return %arg0, %c0_i32 : i32, i32
  }
  func.func @transform_1(%arg0: i32) -> (i32, i32) {
    %c0_i32 = arith.constant 0 : i32
    %c0_i32_0 = arith.constant 0 : i32
    %c0_i32_1 = arith.constant 0 : i32
    return %c0_i32, %c0_i32_0 : i32, i32
  }
  func.func @transform_2(%arg0: i32) -> (i32, i32) {
    %c0_i32 = arith.constant 0 : i32
    %c0_i32_0 = arith.constant 0 : i32
    %c0_i32_1 = arith.constant 0 : i32
    return %c0_i32, %c0_i32_0 : i32, i32
  }
  func.func @transform_3(%arg0: i32) -> (i32, i32) {
    %c0_i32 = arith.constant 0 : i32
    %c0_i32_0 = arith.constant 0 : i32
    %c0_i32_1 = arith.constant 0 : i32
    return %c0_i32, %c0_i32_0 : i32, i32
  }
  func.func @transform_4(%arg0: i32) -> (i32, i32) {
    %c0_i32 = arith.constant 0 : i32
    %c0_i32_0 = arith.constant 0 : i32
    %c0_i32_1 = arith.constant 0 : i32
    return %c0_i32, %c0_i32_0 : i32, i32
  }
  func.func @transform_5(%arg0: i32) -> (i32, i32) {
    %c0_i32 = arith.constant 0 : i32
    %c0_i32_0 = arith.constant 0 : i32
    return %arg0, %c0_i32 : i32, i32
  }
}

</mosaic_0001>

<bundles_post_ra>
// kernel: actor_forward.1
= control target key start
LH: loop header
LB: loop body
LE: loop exit
PB: predicated region body
PF: predicated region fallthrough
CT: control target
= control target key end

     0   :  { %10 = vsyncpa [#allocation3], 0  ;;  %s774_s0 = inlined_call_operand.hbm [shape: f32[8,32], index: 0, kind: input, shape index: {}]   ;;  %s775_s1 = inlined_call_operand.hbm [shape: f32[8,256], index: 1, kind: input, shape index: {}]   ;;  %s776_s2 = inlined_call_operand.hbm [shape: f32[32,256], index: 2, kind: input, shape index: {}]   ;;  %s777_s3 = inlined_call_operand.hbm [shape: f32[256,256], index: 3, kind: input, shape index: {}]   ;;  %s778_s4 = inlined_call_operand.hbm [shape: f32[256,128], index: 4, kind: input, shape index: {}]   ;;  %s779_s5 = inlined_call_operand.hbm [shape: f32[8,128], index: 5, kind: output, shape index: {}]  }
   0x1   :  { %11 = vsyncpa [#allocation6], 0 }
   0x2   :  { %12 = vsyncpa [#allocation9], 0 }
   0x3   :  { %13 = vsyncpa [#allocation4], 0  ;;  %s679_s18 = smov [#allocation5]  }
   0x4   :  { %s30_s19 = sshll.u32 %s679_s18, 4  ;;  %s31_s19 = int_to_ptr.vmem [resolvable:$true] %s30_s19 }
   0x5   :  { %s559_s20 = scalar_lea.vmem %s31_s19, 256  ;;  %p564_p1 = scmp.lt.s32.totalorder %s31_s19, %s31_s19 }
   0x6   :  { %p560_p0 = scmp.ne.s32.totalorder %s31_s19, %s559_s20  ;;  %p565_p2 = scmp.lt.s32.totalorder %s559_s20, %s559_s20 }
   0x8   :  { %p566_p3 = por %p565_p2, %p564_p1 }
   0xa   :  { %p567_p4 = pnand %p566_p3, %p560_p0 }
   0xc   :  { %570 = shalt.err (!%p567_p4)
}
   0xd   :  { %33 = dma.hbm_to_vmem [thread:$0]  %s775_s1, 256, %s31_s19, [#allocation6]  }
   0xe   :  { %s680_s23 = smov [#allocation8]   ;;  %s681_s25 = smov [#allocation2]  }
   0xf   :  { %s51_s24 = sshll.u32 %s680_s23, 4  ;;  %s20_s26 = sshll.u32 %s681_s25, 4  ;;  %s52_s24 = int_to_ptr.vmem [resolvable:$true] %s51_s24  ;;  %s21_s26 = int_to_ptr.vmem [resolvable:$true] %s20_s26 }
  0x10   :  { %s579_s27 = scalar_lea.vmem %s52_s24, 8192  ;;  %p584_p6 = scmp.lt.s32.totalorder %s52_s24, %s52_s24 }
  0x11   :  { %p580_p5 = scmp.ne.s32.totalorder %s52_s24, %s579_s27  ;;  %p585_p7 = scmp.lt.s32.totalorder %s579_s27, %s579_s27 }
  0x13   :  { %p586_p8 = por %p585_p7, %p584_p6 }
  0x15   :  { %p587_p9 = pnand %p586_p8, %p580_p5 }
  0x17   :  { %590 = shalt.err (!%p587_p9)
}
  0x18   :  { %s682_s28 = smov 256   ;;  %s683_s29 = smov 16  }
  0x19   :  { %57 = dma.hbm_to_vmem [thread:$0]  %s777_s3, 8192, %s52_s24, [#allocation9], %s682_s28, %s682_s28, %s683_s29  }
  0x1a   :  { %s599_s1 = scalar_lea.vmem %s21_s26, 128  ;;  %p604_p11 = scmp.lt.s32.totalorder %s21_s26, %s21_s26 }
  0x1b   :  { %p600_p10 = scmp.ne.s32.totalorder %s21_s26, %s599_s1  ;;  %p605_p12 = scmp.lt.s32.totalorder %s599_s1, %s599_s1 }
  0x1d   :  { %p606_p13 = por %p605_p12, %p604_p11 }
  0x1f   :  { %p607_p0 = pnand %p606_p13, %p600_p10 }
  0x21   :  { %610 = shalt.err (!%p607_p0)
}
  0x22   :  { %23 = dma.hbm_to_vmem [thread:$0]  %s774_s0, 128, %s21_s26, [#allocation3]  }
  0x23   :  { %s684_s9 = smov [#allocation7]   ;;  %s685_s11 = smov [#allocation10]  }
  0x24   :  { %s39_s10 = sshll.u32 %s684_s9, 4  ;;  %s63_s12 = sshll.u32 %s685_s11, 4  ;;  %s40_s10 = int_to_ptr.vmem [resolvable:$true] %s39_s10  ;;  %s64_s12 = int_to_ptr.vmem [resolvable:$true] %s63_s12 }
  0x25   :  { %s619_s13 = scalar_lea.vmem %s40_s10, 1024  ;;  %p624_p2 = scmp.lt.s32.totalorder %s40_s10, %s40_s10 }
  0x26   :  { %p620_p1 = scmp.ne.s32.totalorder %s40_s10, %s619_s13  ;;  %p625_p3 = scmp.lt.s32.totalorder %s619_s13, %s619_s13 }
  0x28   :  { %p626_p4 = por %p625_p3, %p624_p2 }
  0x2a   :  { %p627_p5 = pnand %p626_p4, %p620_p1 }
  0x2c   :  { %630 = shalt.err (!%p627_p5)
}
  0x2d   :  { %45 = dma.hbm_to_vmem [thread:$0]  %s776_s2, 1024, %s40_s10, [#allocation6], %s682_s28, %s682_s28, %s683_s29  }
  0x2e   :  { %s639_s15 = scalar_lea.vmem %s64_s12, 4096  ;;  %p644_p7 = scmp.lt.s32.totalorder %s64_s12, %s64_s12 }
  0x2f   :  { %p640_p6 = scmp.ne.s32.totalorder %s64_s12, %s639_s15  ;;  %p645_p8 = scmp.lt.s32.totalorder %s639_s15, %s639_s15 }
  0x31   :  { %p646_p9 = por %p645_p8, %p644_p7 }
  0x33   :  { %p647_p10 = pnand %p646_p9, %p640_p6 }
  0x35   :  { %650 = shalt.err (!%p647_p10)
}
  0x36   :  { %s686_s0 = smov 128   ;;  %s687_s16 = smov 8  }
  0x37   :  { %69 = dma.hbm_to_vmem [thread:$0]  %s778_s4, 4096, %s64_s12, [#allocation9], %s686_s0, %s686_s0, %s687_s16  }
  0x38   :  { %671 = dma.done.wait [#allocation3], 128  }
  0x39   :  { %672 = vsyncadd [#allocation3], 4294967168 }
  0x3a   :  { %673 = dma.done.wait [#allocation6], 1280  }
  0x3b   :  { %674 = vsyncadd [#allocation6], 4294966016 }
  0x3c   :  { %675 = dma.done.wait [#allocation9], 12288  }
  0x3d   :  { %676 = vsyncadd [#allocation9], 4294955008  ;;  %v688_v0 = vmov 0.0   ;;  %v93_v1 = vld [vmem:[#allocation7 + $0x38] sm:$0xff]  ;;  %v92_v2 = vld [vmem:[#allocation7 + $0x30] sm:$0xff]  ;;  %vm106_vm0 = vcmask 261120   ;;  %v96_v45 = vlaneseq }
  0x3e   :  { %174 = vmatprep.mubr.f32.mxu0 %v688_v0  ;;  %v91_v3 = vld [vmem:[#allocation7 + $0x28] sm:$0xff]  ;;  %134 = vmatprep.subr.mxu0 %v93_v1  ;;  %v90_v4 = vld [vmem:[#allocation7 + $0x20] sm:$0xff]  ;;  %v89_v5 = vld [vmem:[#allocation7 + $0x18] sm:$0xff]  ;;  %s689_s2 = smov [#allocation11]  }
  0x3f   :  { %135 = vmatpush1.msra.mxu0 %v92_v2  ;;  %v88_v6 = vld [vmem:[#allocation7 + $0x10] sm:$0xff]  ;;  %v87_v7 = vld [vmem:[#allocation7 + $0x8] sm:$0xff]  ;;  %v86_v8 = vld [vmem:[#allocation7] sm:$0xff]  ;;  %v735_v46 = vshrl.u32 %v96_v45, 7  ;;  %s487_s4 = sshll.u32 %s689_s2, 4  ;;  %s488_s4 = int_to_ptr.vmem [resolvable:$true] %s487_s4 }
  0x40   :  { %136 = vmatprep.subr.mxu0 %v91_v3  ;;  %v85_v9 = vld [vmem:[#allocation2] sm:$0xff]  ;;  %v236_v10 = vld [vmem:[#allocation8 + $0xf8] sm:$0xff]  ;;  %v235_v11 = vld [vmem:[#allocation8 + $0xf0] sm:$0xff]  ;;  %s651_s19 = scalar_lea.vmem %s488_s4, 128  ;;  %p656_p12 = scmp.lt.s32.totalorder %s488_s4, %s488_s4 }
  0x41   :  { %137 = vmatpush1.msra.mxu0 %v90_v4  ;;  %v234_v12 = vld [vmem:[#allocation8 + $0xe8] sm:$0xff]  ;;  %282 = vmatprep.subr.mxu1 %v236_v10  ;;  %v233_v13 = vld [vmem:[#allocation8 + $0xe0] sm:$0xff]  ;;  %v232_v14 = vld [vmem:[#allocation8 + $0xd8] sm:$0xff]  ;;  %v98_v47 = vsub.s32 0, %v735_v46  ;;  %v102_v49 = vsub.s32 1, %v735_v46  ;;  %p652_p11 = scmp.ne.s32.totalorder %s488_s4, %s651_s19  ;;  %p657_p13 = scmp.lt.s32.totalorder %s651_s19, %s651_s19 }
  0x42   :  { %138 = vmatprep.subr.mxu0 %v89_v5  ;;  %283 = vmatpush1.msra.mxu1 %v235_v11  ;;  %v231_v15 = vld [vmem:[#allocation8 + $0xd0] sm:$0xff]  ;;  %v230_v16 = vld [vmem:[#allocation8 + $0xc8] sm:$0xff]  ;;  %v229_v17 = vld [vmem:[#allocation8 + $0xc0] sm:$0xff] }
  0x43   :  { %139 = vmatpush1.msra.mxu0 %v88_v6  ;;  %284 = vmatprep.subr.mxu1 %v234_v12  ;;  %v228_v18 = vld [vmem:[#allocation8 + $0xb8] sm:$0xff]  ;;  %v227_v19 = vld [vmem:[#allocation8 + $0xb0] sm:$0xff]  ;;  %v226_v20 = vld [vmem:[#allocation8 + $0xa8] sm:$0xff]  ;;  %p658_p0 = por %p657_p13, %p656_p12 }
  0x44   :  { %140 = vmatprep.subr.mxu0 %v87_v7  ;;  %285 = vmatpush1.msra.mxu1 %v233_v13  ;;  %v225_v21 = vld [vmem:[#allocation8 + $0xa0] sm:$0xff]  ;;  %v224_v22 = vld [vmem:[#allocation8 + $0x98] sm:$0xff]  ;;  %v223_v23 = vld [vmem:[#allocation8 + $0x90] sm:$0xff] }
  0x45   :  { %141 = vmatpush1.msra.mxu0 %v86_v8  ;;  %286 = vmatprep.subr.mxu1 %v232_v14  ;;  %v222_v24 = vld [vmem:[#allocation8 + $0x88] sm:$0xff]  ;;  %v221_v25 = vld [vmem:[#allocation8 + $0x80] sm:$0xff]  ;;  %v220_v26 = vld [vmem:[#allocation8 + $0x78] sm:$0xff]  ;;  %p659_p1 = pnand %p658_p0, %p652_p11 }
  0x46   :  { %498 = vmatmul.mubr.msk.f32.vlgmr.msra.gmra.mxu0 %vm106_vm0, %v85_v9  ;;  %287 = vmatpush1.msra.mxu1 %v231_v15  ;;  %v219_v27 = vld [vmem:[#allocation8 + $0x70] sm:$0xff]  ;;  %v218_v28 = vld [vmem:[#allocation8 + $0x68] sm:$0xff]  ;;  %v217_v29 = vld [vmem:[#allocation8 + $0x60] sm:$0xff] }
  0x47   :  { %288 = vmatprep.subr.mxu1 %v230_v16  ;;  %v216_v30 = vld [vmem:[#allocation8 + $0x58] sm:$0xff]  ;;  %v215_v31 = vld [vmem:[#allocation8 + $0x50] sm:$0xff]  ;;  %v214_v32 = vld [vmem:[#allocation8 + $0x48] sm:$0xff] }
  0x48   :  { %289 = vmatpush1.msra.mxu1 %v229_v17  ;;  %v213_v33 = vld [vmem:[#allocation8 + $0x40] sm:$0xff]  ;;  %v212_v34 = vld [vmem:[#allocation8 + $0x38] sm:$0xff]  ;;  %v211_v35 = vld [vmem:[#allocation8 + $0x30] sm:$0xff] }
  0x49   :  { %290 = vmatprep.subr.mxu1 %v228_v18  ;;  %v210_v36 = vld [vmem:[#allocation8 + $0x28] sm:$0xff]  ;;  %v209_v37 = vld [vmem:[#allocation8 + $0x20] sm:$0xff]  ;;  %v208_v38 = vld [vmem:[#allocation8 + $0x18] sm:$0xff] }
  0x4a   :  { %291 = vmatpush1.msra.mxu1 %v227_v19  ;;  %v207_v39 = vld [vmem:[#allocation8 + $0x10] sm:$0xff]  ;;  %v206_v40 = vld [vmem:[#allocation8 + $0x8] sm:$0xff]  ;;  %v205_v41 = vld [vmem:[#allocation8] sm:$0xff] }
  0x4b   :  { %292 = vmatprep.subr.mxu1 %v226_v20  ;;  %v268_v42 = vld [vmem:[#allocation8 + $0x1f8] sm:$0xff]  ;;  %v267_v43 = vld [vmem:[#allocation8 + $0x1f0] sm:$0xff]  ;;  %v266_v44 = vld [vmem:[#allocation8 + $0x1e8] sm:$0xff] }
  0x4c   :  { %293 = vmatpush1.msra.mxu1 %v225_v21  ;;  %v94_v48 = vld [vmem:[#allocation5] ss:$8 sm:$0x3]  ;;  %v265_v0 = vld [vmem:[#allocation8 + $0x1e0] sm:$0xff]  ;;  %v262_v3 = vld [vmem:[#allocation8 + $0x1c8] sm:$0xff] }
  0x4d   :  { %294 = vmatprep.subr.mxu1 %v224_v22  ;;  %v99_v50 = vrot.slane %v94_v48, %v98_v47  ;;  %v103_v51 = vrot.slane %v94_v48, %v102_v49  ;;  %v264_v1 = vld [vmem:[#allocation8 + $0x1d8] sm:$0xff]  ;;  %v263_v2 = vld [vmem:[#allocation8 + $0x1d0] sm:$0xff]  ;;  %v261_v4 = vld [vmem:[#allocation8 + $0x1c0] sm:$0xff] }
  0x4e   :  { %295 = vmatpush1.msra.mxu1 %v223_v23  ;;  %v260_v5 = vld [vmem:[#allocation8 + $0x1b8] sm:$0xff]  ;;  %v259_v6 = vld [vmem:[#allocation8 + $0x1b0] sm:$0xff]  ;;  %v258_v7 = vld [vmem:[#allocation8 + $0x1a8] sm:$0xff] }
  0x4f   :  { %296 = vmatprep.subr.mxu1 %v222_v24  ;;  %v257_v8 = vld [vmem:[#allocation8 + $0x1a0] sm:$0xff]  ;;  %v256_v9 = vld [vmem:[#allocation8 + $0x198] sm:$0xff]  ;;  %v255_v10 = vld [vmem:[#allocation8 + $0x190] sm:$0xff] }
  0x50   :  { %297 = vmatpush1.msra.mxu1 %v221_v25  ;;  %v254_v11 = vld [vmem:[#allocation8 + $0x188] sm:$0xff]  ;;  %v253_v12 = vld [vmem:[#allocation8 + $0x180] sm:$0xff]  ;;  %v252_v13 = vld [vmem:[#allocation8 + $0x178] sm:$0xff] }
  0x51   :  { %298 = vmatprep.subr.mxu1 %v220_v26  ;;  %v251_v14 = vld [vmem:[#allocation8 + $0x170] sm:$0xff]  ;;  %v250_v15 = vld [vmem:[#allocation8 + $0x168] sm:$0xff]  ;;  %v249_v16 = vld [vmem:[#allocation8 + $0x160] sm:$0xff] }
  0x52   :  { %299 = vmatpush1.msra.mxu1 %v219_v27  ;;  %v248_v17 = vld [vmem:[#allocation8 + $0x158] sm:$0xff]  ;;  %v247_v18 = vld [vmem:[#allocation8 + $0x150] sm:$0xff]  ;;  %v246_v19 = vld [vmem:[#allocation8 + $0x148] sm:$0xff] }
  0x53   :  { %300 = vmatprep.subr.mxu1 %v218_v28  ;;  %v245_v20 = vld [vmem:[#allocation8 + $0x140] sm:$0xff]  ;;  %v244_v21 = vld [vmem:[#allocation8 + $0x138] sm:$0xff]  ;;  %v243_v22 = vld [vmem:[#allocation8 + $0x130] sm:$0xff] }
  0x54   :  { %301 = vmatpush1.msra.mxu1 %v217_v29  ;;  %v242_v23 = vld [vmem:[#allocation8 + $0x128] sm:$0xff]  ;;  %v241_v24 = vld [vmem:[#allocation8 + $0x120] sm:$0xff]  ;;  %v240_v25 = vld [vmem:[#allocation8 + $0x118] sm:$0xff] }
  0x55   :  { %302 = vmatprep.subr.mxu1 %v216_v30  ;;  %v239_v26 = vld [vmem:[#allocation8 + $0x110] sm:$0xff]  ;;  %v238_v27 = vld [vmem:[#allocation8 + $0x108] sm:$0xff]  ;;  %v237_v28 = vld [vmem:[#allocation8 + $0x100] sm:$0xff] }
  0x56   :  { %303 = vmatpush1.msra.mxu1 %v215_v31  ;;  %v270_v45 = vld [vmem:[#allocation5 + $0x1] ss:$8 sm:$0x3] }
  0x57   :  { %304 = vmatprep.subr.mxu1 %v214_v32  ;;  %v275_v48 = vrot.slane %v270_v45, %v98_v47 }
  0x58   :  { %305 = vmatpush1.msra.mxu1 %v213_v33 }
  0x59   :  { %306 = vmatprep.subr.mxu1 %v212_v34 }
  0x5a   :  { %307 = vmatpush1.msra.mxu1 %v211_v35 }
  0x5b   :  { %308 = vmatprep.subr.mxu1 %v210_v36 }
  0x5c   :  { %309 = vmatpush1.msra.mxu1 %v209_v37 }
  0x5d   :  { %310 = vmatprep.subr.mxu1 %v208_v38 }
  0x5e   :  { %311 = vmatpush1.msra.mxu1 %v207_v39 }
  0x5f   :  { %312 = vmatprep.subr.mxu1 %v206_v40 }
  0x60   :  { %313 = vmatpush1.msra.mxu1 %v205_v41 }
  0x61   :  { %314 = vmatprep.subr.mxu1 %v268_v42  ;;  %v407_v42 = vld [vmem:[#allocation10 + $0xf8] sm:$0xff] }
  0x62   :  { %315 = vmatpush2.msra.mxu1 %v267_v43  ;;  %v391_v43 = vld [vmem:[#allocation10 + $0x78] sm:$0xff]  ;;  %499 = vmatprep.subr.mxu0 %v407_v42 }
  0x63   :  { %316 = vmatprep.subr.mxu1 %v266_v44  ;;  %v406_v44 = vld [vmem:[#allocation10 + $0xf0] sm:$0xff]  ;;  %500 = vmatpush3.msra.mxu0 %v391_v43 }
  0x64   :  { %317 = vmatpush2.msra.mxu1 %v265_v0  ;;  %501 = vmatprep.subr.mxu0 %v406_v44  ;;  %v388_v0 = vld [vmem:[#allocation10 + $0x60] sm:$0xff] }
  0x65   :  { %318 = vmatprep.subr.mxu1 %v264_v1  ;;  %v403_v1 = vld [vmem:[#allocation10 + $0xd8] sm:$0xff] }
  0x66   :  { %319 = vmatpush2.msra.mxu1 %v263_v2  ;;  %v387_v2 = vld [vmem:[#allocation10 + $0x58] sm:$0xff] }
  0x67   :  { %320 = vmatprep.subr.mxu1 %v262_v3  ;;  %v402_v3 = vld [vmem:[#allocation10 + $0xd0] sm:$0xff] }
  0x68   :  { %321 = vmatpush2.msra.mxu1 %v261_v4  ;;  %v386_v4 = vld [vmem:[#allocation10 + $0x50] sm:$0xff] }
  0x69   :  { %322 = vmatprep.subr.mxu1 %v260_v5  ;;  %v401_v5 = vld [vmem:[#allocation10 + $0xc8] sm:$0xff] }
  0x6a   :  { %323 = vmatpush2.msra.mxu1 %v259_v6  ;;  %v385_v6 = vld [vmem:[#allocation10 + $0x48] sm:$0xff] }
  0x6b   :  { %324 = vmatprep.subr.mxu1 %v258_v7  ;;  %v400_v7 = vld [vmem:[#allocation10 + $0xc0] sm:$0xff] }
  0x6c   :  { %325 = vmatpush2.msra.mxu1 %v257_v8  ;;  %v384_v8 = vld [vmem:[#allocation10 + $0x40] sm:$0xff] }
  0x6d   :  { %326 = vmatprep.subr.mxu1 %v256_v9  ;;  %v399_v9 = vld [vmem:[#allocation10 + $0xb8] sm:$0xff] }
  0x6e   :  { %327 = vmatpush2.msra.mxu1 %v255_v10  ;;  %v383_v10 = vld [vmem:[#allocation10 + $0x38] sm:$0xff] }
  0x6f   :  { %328 = vmatprep.subr.mxu1 %v254_v11  ;;  %v398_v11 = vld [vmem:[#allocation10 + $0xb0] sm:$0xff] }
  0x70   :  { %329 = vmatpush2.msra.mxu1 %v253_v12  ;;  %v382_v12 = vld [vmem:[#allocation10 + $0x30] sm:$0xff] }
  0x71   :  { %330 = vmatprep.subr.mxu1 %v252_v13  ;;  %v397_v13 = vld [vmem:[#allocation10 + $0xa8] sm:$0xff] }
  0x72   :  { %331 = vmatpush2.msra.mxu1 %v251_v14  ;;  %v381_v14 = vld [vmem:[#allocation10 + $0x28] sm:$0xff] }
  0x73   :  { %332 = vmatprep.subr.mxu1 %v250_v15  ;;  %v396_v15 = vld [vmem:[#allocation10 + $0xa0] sm:$0xff] }
  0x74   :  { %333 = vmatpush2.msra.mxu1 %v249_v16  ;;  %v380_v16 = vld [vmem:[#allocation10 + $0x20] sm:$0xff] }
  0x75   :  { %334 = vmatprep.subr.mxu1 %v248_v17  ;;  %v395_v17 = vld [vmem:[#allocation10 + $0x98] sm:$0xff] }
  0x76   :  { %335 = vmatpush2.msra.mxu1 %v247_v18  ;;  %v379_v18 = vld [vmem:[#allocation10 + $0x18] sm:$0xff] }
  0x77   :  { %336 = vmatprep.subr.mxu1 %v246_v19  ;;  %v394_v19 = vld [vmem:[#allocation10 + $0x90] sm:$0xff] }
  0x78   :  { %337 = vmatpush2.msra.mxu1 %v245_v20  ;;  %v378_v20 = vld [vmem:[#allocation10 + $0x10] sm:$0xff] }
  0x79   :  { %338 = vmatprep.subr.mxu1 %v244_v21  ;;  %v393_v21 = vld [vmem:[#allocation10 + $0x88] sm:$0xff] }
  0x7a   :  { %339 = vmatpush2.msra.mxu1 %v243_v22  ;;  %v377_v22 = vld [vmem:[#allocation10 + $0x8] sm:$0xff] }
  0x7b   :  { %340 = vmatprep.subr.mxu1 %v242_v23  ;;  %v392_v23 = vld [vmem:[#allocation10 + $0x80] sm:$0xff] }
  0x7c   :  { %341 = vmatpush2.msra.mxu1 %v241_v24  ;;  %v376_v24 = vld [vmem:[#allocation10] sm:$0xff] }
  0x7d   :  { %342 = vmatprep.subr.mxu1 %v240_v25 }
  0x7e   :  { %343 = vmatpush2.msra.mxu1 %v239_v26 }
  0x7f   :  { %344 = vmatprep.subr.mxu1 %v238_v27 }
  0x80   :  { %345 = vmatpush2.msra.mxu1 %v237_v28 }
 0x106   :  { %v176_v52 = vpop.f32.mrf.mxu0 }
 0x107   :  { %v177_v53 = vadd.f32 %v176_v52, %v99_v50  ;;  %v279_v50 = vrot.slane %v270_v45, %v102_v49  ;;  %v390_v49 = vld [vmem:[#allocation10 + $0x70] sm:$0xff] }
 0x108   :  { %v178_v54 = vpop.f32.mrf.mxu0  ;;  %502 = vmatpush3.msra.mxu0 %v390_v49 }
 0x109   :  { %v181_v55 = vmul.f32 0.01, %v177_v53  ;;  %v179_v56 = vadd.f32 %v178_v54, %v103_v51 }
 0x10b   :  { %v182_v57 = vmul.f32 0.01, %v179_v56  ;;  %v743_v58 = vmax.f32 %v177_v53, %v181_v55 }
 0x10d   :  { %v745_v59 = vmax.f32 %v179_v56, %v182_v57  ;;  %v190_v62 = vmul.f32 %v743_v58, %v743_v58 }
 0x10f   :  { %v185_v60 = vadd.f32 %v745_v59, %v743_v58  ;;  %v191_v61 = vmul.f32 %v745_v59, %v745_v59 }
 0x111   :  { %186 = vadd.xlane.f32.xlu0 %v185_v60  ;;  %v192_v63 = vadd.f32 %v191_v61, %v190_v62  ;;  %v405_v61 = vld [vmem:[#allocation10 + $0xe8] sm:$0xff] }
 0x112   :  { %503 = vmatprep.subr.mxu0 %v405_v61  ;;  %v389_v62 = vld [vmem:[#allocation10 + $0x68] sm:$0xff] }
 0x113   :  { %504 = vmatpush3.msra.mxu0 %v389_v62 }
 0x115   :  { %193 = vadd.xlane.f32.xlu0 %v192_v63  ;;  %v404_v63 = vld [vmem:[#allocation10 + $0xe0] sm:$0xff] }
 0x116   :  { %505 = vmatprep.subr.mxu0 %v404_v63 }
 0x117   :  { %506 = vmatpush3.msra.mxu0 %v388_v0 }
 0x118   :  { %507 = vmatprep.subr.mxu0 %v403_v1 }
 0x119   :  { %508 = vmatpush3.msra.mxu0 %v387_v2 }
 0x11a   :  { %509 = vmatprep.subr.mxu0 %v402_v3 }
 0x11b   :  { %510 = vmatpush3.msra.mxu0 %v386_v4 }
 0x11c   :  { %511 = vmatprep.subr.mxu0 %v401_v5 }
 0x11d   :  { %512 = vmatpush3.msra.mxu0 %v385_v6 }
 0x11e   :  { %513 = vmatprep.subr.mxu0 %v400_v7 }
 0x11f   :  { %514 = vmatpush3.msra.mxu0 %v384_v8 }
 0x120   :  { %515 = vmatprep.subr.mxu0 %v399_v9 }
 0x121   :  { %516 = vmatpush3.msra.mxu0 %v383_v10 }
 0x122   :  { %517 = vmatprep.subr.mxu0 %v398_v11 }
 0x123   :  { %518 = vmatpush3.msra.mxu0 %v382_v12 }
 0x124   :  { %519 = vmatprep.subr.mxu0 %v397_v13 }
 0x125   :  { %520 = vmatpush3.msra.mxu0 %v381_v14 }
 0x126   :  { %521 = vmatprep.subr.mxu0 %v396_v15 }
 0x127   :  { %522 = vmatpush3.msra.mxu0 %v380_v16 }
 0x128   :  { %523 = vmatprep.subr.mxu0 %v395_v17 }
 0x129   :  { %524 = vmatpush3.msra.mxu0 %v379_v18 }
 0x12a   :  { %525 = vmatprep.subr.mxu0 %v394_v19 }
 0x12b   :  { %526 = vmatpush3.msra.mxu0 %v378_v20 }
 0x12c   :  { %527 = vmatprep.subr.mxu0 %v393_v21 }
 0x12d   :  { %528 = vmatpush3.msra.mxu0 %v377_v22 }
 0x12e   :  { %529 = vmatprep.subr.mxu0 %v392_v23 }
 0x12f   :  { %530 = vmatpush3.msra.mxu0 %v376_v24 }
 0x19a   :  { %v187_v29 = vpop.xlane.xlu0 %186 }
 0x19b   :  { %v189_v30 = vmul.f32 0.00390625, %v187_v29 }
 0x19d   :  { %v196_v32 = vmul.f32 %v189_v30, %v189_v30  ;;  %v201_v37 = vsub.f32 %v743_v58, %v189_v30  ;;  %v202_v38 = vsub.f32 %v745_v59, %v189_v30 }
 0x19e   :  { %v194_v31 = vpop.xlane.xlu0 %193 }
 0x19f   :  { %v195_v33 = vmul.f32 0.00390625, %v194_v31 }
 0x1a1   :  { %v197_v34 = vsub.f32 %v195_v33, %v196_v32 }
 0x1a3   :  { %v198_v35 = vmax.f32 %v197_v34, 0.0 }
 0x1a5   :  { %v199_v36 = vadd.f32 1e-05, %v198_v35 }
 0x1a7   :  { %545 = vrsqrt.f32 %v199_v36 }
 0x1b4   :  { %v546_v39 = vpop.eup %545 }
 0x1b5   :  { %v204_v40 = vmul.f32 %v546_v39, %v202_v38  ;;  %v203_v41 = vmul.f32 %v546_v39, %v201_v37  ;;  %v408_v39 = vld [vmem:[#allocation5 + $0x2] ss:$0 sm:$0xff] }
 0x1b7   :  { %346 = vmatprep.mubr.f32.mxu1 %v204_v40 }
 0x1b8   :  { %347 = vmatmul.mubr.f32.vlgmr.msra.gmra.mxu1 %v203_v41 }
 0x278   :  { %v348_v51 = vpop.f32.mrf.mxu1 }
 0x279   :  { %v349_v52 = vadd.f32 %v348_v51, %v275_v48 }
 0x27a   :  { %v350_v53 = vpop.f32.mrf.mxu1 }
 0x27b   :  { %v353_v54 = vmul.f32 0.01, %v349_v52  ;;  %v351_v55 = vadd.f32 %v350_v53, %v279_v50 }
 0x27d   :  { %v354_v56 = vmul.f32 0.01, %v351_v55  ;;  %v759_v57 = vmax.f32 %v349_v52, %v353_v54 }
 0x27f   :  { %v761_v58 = vmax.f32 %v351_v55, %v354_v56  ;;  %v361_v46 = vmul.f32 %v759_v57, %v759_v57 }
 0x281   :  { %v357_v59 = vadd.f32 %v761_v58, %v759_v57  ;;  %v362_v60 = vmul.f32 %v761_v58, %v761_v58 }
 0x283   :  { %358 = vadd.xlane.f32.xlu1 %v357_v59  ;;  %v363_v47 = vadd.f32 %v362_v60, %v361_v46 }
 0x287   :  { %364 = vadd.xlane.f32.xlu1 %v363_v47 }
 0x30c   :  { %v359_v25 = vpop.xlane.xlu1 %358 }
 0x30d   :  { %v360_v26 = vmul.f32 0.00390625, %v359_v25 }
 0x30f   :  { %v367_v28 = vmul.f32 %v360_v26, %v360_v26  ;;  %v372_v33 = vsub.f32 %v759_v57, %v360_v26  ;;  %v373_v34 = vsub.f32 %v761_v58, %v360_v26 }
 0x310   :  { %v365_v27 = vpop.xlane.xlu1 %364 }
 0x311   :  { %v366_v29 = vmul.f32 0.00390625, %v365_v27 }
 0x313   :  { %v368_v30 = vsub.f32 %v366_v29, %v367_v28 }
 0x315   :  { %v369_v31 = vmax.f32 %v368_v30, 0.0 }
 0x317   :  { %v370_v32 = vadd.f32 1e-05, %v369_v31 }
 0x319   :  { %547 = vrsqrt.f32 %v370_v32 }
 0x326   :  { %v548_v35 = vpop.eup %547 }
 0x327   :  { %v375_v36 = vmul.f32 %v548_v35, %v373_v34  ;;  %v374_v37 = vmul.f32 %v548_v35, %v372_v33 }
 0x329   :  { %473 = vmatprep.mubr.f32.mxu0 %v375_v36 }
 0x32a   :  { %474 = vmatmul.mubr.f32.vlgmr.msra.gmra.mxu0 %v374_v37 }
 0x3ea   :  { %v531_v38 = vpop.f32.mrf.mxu0 }
 0x3ec   :  { %v532_v40 = vpop.f32.mrf.mxu0 }
 0x3ed   :  { %v533_v41 = vadd.f32 %v532_v40, %v531_v38 }
 0x3ef   :  { %v476_v42 = vadd.f32 %v533_v41, %v408_v39 }
 0x3f1   :  { %549 = vtanh.f32 %v476_v42 }
 0x3fe   :  { %v550_v43 = vpop.eup %549 }
 0x3ff   :  { %480 = vst [vmem:[#allocation11] sm:$0xff] %v550_v43 }
 0x400   :  { %662 = shalt.err (!%p659_p1)
}
 0x401   :  { %490 = dma.vmem_to_hbm [thread:$0]  %s488_s4, 128, %s779_s5, [#allocation4]  }
 0x402   :  { %677 = dma.done.wait [#allocation4], 128  }
 0x403   :  { %678 = vsyncadd [#allocation4], 4294967168 }
 0x404   :  { %494 = vsyncpa [#allocation3], 1 }
 0x405   :  { %495 = vsyncpa [#allocation6], 1 }
 0x406   :  { %496 = vsyncpa [#allocation9], 1 }
 0x407   :  { %497 = vsyncpa [#allocation4], 1 }

</bundles_post_ra>
